<compile_context>
chip_gen: v6e
topology: v6e:2x2x1
jax: 0.10.0
libtpu: 0.0.40
codegen_flags: <defaults>
</compile_context>

<pallas_src>
import numpy as np
import jax
import jax.numpy as jnp
from jax.experimental import pallas as pl
from jax.experimental.pallas import tpu as pltpu

_LANES = 128
_ROW_ALIGN = 16                     # sublane multiple valid for f32 and bf16 tiles
_DIVISORS_128 = (1, 2, 4, 8, 16, 32, 64, 128)


def _round_up(x, m):
    return ((x + m - 1) // m) * m


def _pick_tile_rows(n_rows, row_bytes, *, target_bytes=1 << 20, min_steps=8):
    """Row tile giving ~target_bytes output blocks but at least `min_steps` grid steps."""
    tr = max(_ROW_ALIGN, (target_bytes // max(row_bytes, 1)) // _ROW_ALIGN * _ROW_ALIGN)
    cap = max(_ROW_ALIGN, _round_up(pl.cdiv(n_rows, min_steps), _ROW_ALIGN))
    return min(tr, cap)


# ---------------------------------------------------------------------------
# Kernel: one MXU matmul fuses lane expansion, *freq and +phase; VPU/EUP do cos.
# ---------------------------------------------------------------------------
def _time_encode_kernel(ts_ref, f_ref, out_ref):
    # ts_ref : (TR, KCOLS) f32 -- [pack timestamps | 1.0 | zero pad] per packed row
    # f_ref  : (KCOLS, L_OUT) f32 -- block-diagonal basis_freq rows + tiled-phase row
    # out_ref: (TR, L_OUT)        -- lane-dense packed view of (TR*pack, Dp)
    x = jnp.dot(ts_ref[...], f_ref[...],
                preferred_element_type=jnp.float32,
                precision=jax.lax.Precision.HIGHEST)
    out_ref[...] = jnp.cos(x).astype(out_ref.dtype)


def _build_fmat(basis_freq, phase, D, Dp, pack, kcols, l_out):
    """F[j, l] = basis_freq[l % Dp] on the j-th Dp block (j < pack); F[pack, l] = phase[l % Dp]."""
    freq_pad = jnp.zeros((Dp,), jnp.float32).at[:D].set(basis_freq)
    phase_pad = jnp.zeros((Dp,), jnp.float32).at[:D].set(phase)
    eye = jnp.eye(pack, dtype=jnp.float32)                                  # (pack, pack)
    freq_rows = (eye[:, :, None] * freq_pad[None, None, :]).reshape(pack, l_out)
    phase_row = jnp.tile(phase_pad, pack).reshape(1, l_out)
    zero_rows = jnp.zeros((kcols - pack - 1, l_out), jnp.float32)
    return jnp.concatenate([freq_rows, phase_row, zero_rows], axis=0)       # (kcols, l_out)


def time_encode(ts, basis_freq, phase, *, out_dtype=jnp.float32, force_pallas=False):
    """ts: (B, L); basis_freq, phase: (D,)  ->  (B, L, D) = cos(ts*freq + phase)."""
    B, L = ts.shape
    D = int(basis_freq.shape[0])
    R = B * L

    ts = ts.astype(jnp.float32)
    basis_freq = basis_freq.astype(jnp.float32)
    phase = phase.astype(jnp.float32)

    # Tiny problems: kernel launch / per-step overhead dominates -> let XLA fuse.
    if not force_pallas and R * D < 16384:
        return jnp.cos(
            ts[:, :, None] * basis_freq[None, None, :] + phase[None, None, :]
        ).astype(out_dtype)

    # ---- lane-dense packing geometry ---------------------------------------
    if D <= _LANES:
        Dp = next(d for d in _DIVISORS_128 if d >= D)   # pad D up to a divisor of 128
        pack = _LANES // Dp                             # logical rows per 128-lane output row
        l_out = _LANES
    else:
        Dp = _round_up(D, _LANES)                       # lane-dense wide row
        pack = 1
        l_out = Dp
    kcols = _round_up(pack + 1, 8)                      # ts cols + ones col, sublane-aligned

    out_itemsize = jnp.dtype(out_dtype).itemsize
    P = pl.cdiv(R, pack)                                # packed output rows
    TR = _pick_tile_rows(P, l_out * out_itemsize)
    Pp = _round_up(P, TR)
    grid = Pp // TR

    # ---- build packed/augmented ts and the fused freq+phase matrix ---------
    pad = Pp * pack - R
    ts_flat = ts.reshape(R)
    ts_p = jnp.pad(ts_flat, (0, pad)) if pad else ts_flat
    ts_pack = ts_p.reshape(Pp, pack)
    ts_aug = jnp.concatenate(
        [ts_pack,
         jnp.ones((Pp, 1), jnp.float32),
         jnp.zeros((Pp, kcols - pack - 1), jnp.float32)],
        axis=1)                                          # (Pp, kcols)

    fmat = _build_fmat(basis_freq, phase, D, Dp, pack, kcols, l_out)

    cost = pl.CostEstimate(
        flops=int(2 * Pp * kcols * l_out),
        transcendentals=int(Pp * l_out),
        bytes_accessed=int(Pp * kcols * 4 + kcols * l_out * 4 + Pp * l_out * out_itemsize),
    )

    out = pl.pallas_call(
        _time_encode_kernel,
        out_shape=jax.ShapeDtypeStruct((Pp, l_out), out_dtype),
        grid=(grid,),
        in_specs=[
            pl.BlockSpec((TR, kcols), lambda i: (i, 0)),
            pl.BlockSpec((kcols, l_out), lambda i: (0, 0)),
        ],
        out_specs=pl.BlockSpec((TR, l_out), lambda i: (i, 0)),
        compiler_params=pltpu.CompilerParams(dimension_semantics=("parallel",)),
        cost_estimate=cost,
    )(ts_aug, fmat)

    # Unpack lane-dense rows back to logical (R, D) and drop padding.
    out = out.reshape(Pp * pack, Dp)
    if Dp != D or Pp * pack != R:
        out = out[:R, :D]
    return out.reshape(B, L, D)


if __name__ == "__main__":
    # Module hyperparams (deterministic init, as in TimeEncode.__init__).
    expand_dim = 32
    basis_freq = jnp.asarray(1.0 / 10 ** np.linspace(0, 9, expand_dim), dtype=jnp.float32)
    phase = jnp.zeros((expand_dim,), dtype=jnp.float32)

    def ref_fn(t, f, p):
        return jnp.cos(t[:, :, None] * f[None, None, :] + p[None, None, :])

    key = jax.random.PRNGKey(0)
    k1, k2, k3 = jax.random.split(key, 3)

    # 1) Spec-sized small input (batch=2, seq=8) — force the Pallas kernel path.
    ts_small = jax.random.uniform(k1, (2, 8), dtype=jnp.float32) * 100.0
    out_small = jax.block_until_ready(
        time_encode(ts_small, basis_freq, phase, force_pallas=True))
    np.testing.assert_allclose(
        np.asarray(out_small), np.asarray(ref_fn(ts_small, basis_freq, phase)),
        rtol=1e-4, atol=1e-4)

    # 2) Ragged row count (not divisible by the lane pack) — exercises row padding.
    ts_rag = jax.random.uniform(k2, (3, 37), dtype=jnp.float32) * 100.0
    out_rag = jax.block_until_ready(
        time_encode(ts_rag, basis_freq, phase, force_pallas=True))
    np.testing.assert_allclose(
        np.asarray(out_rag), np.asarray(ref_fn(ts_rag, basis_freq, phase)),
        rtol=1e-4, atol=1e-4)

    # 3) Larger input — multi-step pipelined grid via the auto-dispatch path.
    ts_big = jax.random.uniform(k3, (4, 8192), dtype=jnp.float32) * 100.0
    out_big = jax.block_until_ready(time_encode(ts_big, basis_freq, phase))
    np.testing.assert_allclose(
        np.asarray(out_big), np.asarray(ref_fn(ts_big, basis_freq, phase)),
        rtol=1e-4, atol=1e-4)

    # 4) D that does not divide 128 — padded-lane packing (Dp=32, columns sliced off).
    bf24 = jnp.asarray(1.0 / 10 ** np.linspace(0, 9, 24), dtype=jnp.float32)
    ph24 = jnp.zeros((24,), dtype=jnp.float32)
    ts24 = jax.random.uniform(k1, (2, 16), dtype=jnp.float32) * 100.0
    out24 = jax.block_until_ready(time_encode(ts24, bf24, ph24, force_pallas=True))
    np.testing.assert_allclose(
        np.asarray(out24), np.asarray(ref_fn(ts24, bf24, ph24)), rtol=1e-4, atol=1e-4)

    # 5) D > 128 — wide lane-dense rows (Dp = 256, pack = 1).
    bf150 = jnp.asarray(1.0 / 10 ** np.linspace(0, 9, 150), dtype=jnp.float32)
    ph150 = jnp.full((150,), 0.1, dtype=jnp.float32)
    ts150 = jax.random.uniform(k2, (2, 8), dtype=jnp.float32) * 100.0
    out150 = jax.block_until_ready(time_encode(ts150, bf150, ph150, force_pallas=True))
    np.testing.assert_allclose(
        np.asarray(out150), np.asarray(ref_fn(ts150, bf150, ph150)), rtol=1e-4, atol=1e-4)

    # 6) bf16 output knob (halves store traffic on v5e/v6e) — compute stays f32.
    out_bf16 = jax.block_until_ready(
        time_encode(ts_small, basis_freq, phase, out_dtype=jnp.bfloat16, force_pallas=True))
    np.testing.assert_allclose(
        np.asarray(out_bf16, dtype=np.float32),
        np.asarray(ref_fn(ts_small, basis_freq, phase)), rtol=2e-2, atol=2e-2)

    print("KERNEL_OK")
</pallas_src>

<mosaic_0001>
module attributes {stable_mosaic.version = 11 : i64} {
  func.func @_time_encode_kernel(%arg0: i32, %arg1: memref<16x8xf32, #tpu.memory_space<vmem>>, %arg2: memref<8x128xf32, #tpu.memory_space<vmem>>, %arg3: memref<16x128xf32, #tpu.memory_space<vmem>>) attributes {dimension_semantics = [#tpu.dimension_semantics<parallel>], iteration_bounds = array<i64: 1>, scalar_prefetch = 0 : i64, scratch_operands = 0 : i64, tpu.core_type = #tpu.core_type<tc>, window_params = [{transform_indices = @transform_0, window_bounds = array<i64: 16, 8>}, {pipeline_mode = #tpu.pipeline_mode<synchronous>, transform_indices = @transform_1, window_bounds = array<i64: 8, 128>}, {transform_indices = @transform_2, window_bounds = array<i64: 16, 128>}]} {
    %c0 = arith.constant 0 : index
    %c0_0 = arith.constant 0 : index
    %0 = vector.load %arg1[%c0, %c0_0] : memref<16x8xf32, #tpu.memory_space<vmem>>, vector<16x8xf32>
    %c0_1 = arith.constant 0 : index
    %c0_2 = arith.constant 0 : index
    %1 = vector.load %arg2[%c0_1, %c0_2] : memref<8x128xf32, #tpu.memory_space<vmem>>, vector<8x128xf32>
    %cst = arith.constant dense<0.000000e+00> : vector<16x128xf32>
    %2 = tpu.matmul %0, %1, %cst {dimension_numbers = #tpu.dot_dimension_numbers<[1], [0], [0], [1], [0, 0, 1, 1], [], []>, precision = #tpu.contract_precision<fp32>} : vector<16x8xf32>, vector<8x128xf32>, vector<16x128xf32> -> vector<16x128xf32>
    %3 = math.cos %2 : vector<16x128xf32>
    %c0_3 = arith.constant 0 : index
    %c0_4 = arith.constant 0 : index
    %4 = vector.load %arg3[%c0_3, %c0_4] : memref<16x128xf32, #tpu.memory_space<vmem>>, vector<16x128xf32>
    tpu.vector_store %arg3[%c0_3, %c0_4], %3 {strides = array<i32>} : memref<16x128xf32, #tpu.memory_space<vmem>>, vector<16x128xf32>,
    return
  }
  func.func @transform_0(%arg0: i32) -> (i32, i32) {
    %c0_i32 = arith.constant 0 : i32
    %c0_i32_0 = arith.constant 0 : i32
    return %arg0, %c0_i32 : i32, i32
  }
  func.func @transform_1(%arg0: i32) -> (i32, i32) {
    %c0_i32 = arith.constant 0 : i32
    %c0_i32_0 = arith.constant 0 : i32
    %c0_i32_1 = arith.constant 0 : i32
    return %c0_i32, %c0_i32_0 : i32, i32
  }
  func.func @transform_2(%arg0: i32) -> (i32, i32) {
    %c0_i32 = arith.constant 0 : i32
    %c0_i32_0 = arith.constant 0 : i32
    return %arg0, %c0_i32 : i32, i32
  }
}

</mosaic_0001>

<bundles_post_ra>
// kernel: tpu_custom_call.1
= control target key start
LH: loop header
LB: loop body
LE: loop exit
PB: predicated region body
PF: predicated region fallthrough
CT: control target
= control target key end

     0   :  { %vm15_vm0 = vcmask 64512   ;;  %s951_s0 = inlined_call_operand.vmem [shape: f32[16,8], index: 0, kind: input, shape index: {}]   ;;  %s952_s1 = inlined_call_operand.vmem [shape: f32[8,128], index: 1, kind: input, shape index: {}]   ;;  %s953_s2 = inlined_call_operand.hbm [shape: f32[16,128], index: 2, kind: output, shape index: {}]  }
   0x1   :  { %v14_v0 = vld [vmem:[%s952_s1] sm:$0xff]  ;;  %v13_v2 = vld [vmem:[%s951_s0 + $0x8] sm:$0xff] }
   0x2   :  { %v12_v1 = vld [vmem:[%s951_s0] sm:$0xff]  ;;  %v53_v3 = vand.u32 4294901760, %v14_v0  ;;  %v20_v5 = vsel %vm15_vm0, %v13_v2, 0 }
   0x3   :  { %v17_v4 = vsel %vm15_vm0, %v12_v1, 0 }
   0x4   :  { %7 = vsyncpa [#allocation3], 0  ;;  %v88_v6 = vand.u32 4294901760, %v17_v4  ;;  %v98_v7 = vand.u32 4294901760, %v20_v5  ;;  %761 = vmatprep.subr.mxu0 %v53_v3  ;;  %v140_v8 = vsub.f32 %v14_v0, %v53_v3  ;;  %v838_v60 = vmov 683565275  }
   0x5   :  { %762 = vmatpush3.msra.mxu0 %v53_v3  ;;  %v839_v63 = vmov 2475754826   ;;  %v840_v1 = vmov 2131351028   ;;  %s844_s0 = smov [#allocation2]  }
   0x6   :  { %v89_v9 = vsub.f32 %v17_v4, %v88_v6  ;;  %768 = vmatprep.mubr.f32.mxu1 %v88_v6  ;;  %v99_v10 = vsub.f32 %v20_v5, %v98_v7  ;;  %v141_v11 = vand.u32 4294901760, %v140_v8  ;;  %771 = vmatprep.subr.mxu0 %v140_v8  ;;  %v842_v5 = vmov 920167782   ;;  %s724_s1 = sshll.u32 %s844_s0, 4  ;;  %s725_s1 = int_to_ptr.vmem [resolvable:$true] %s724_s1 }
   0x7   :  { %s816_s15 = scalar_lea.vmem %s725_s1, 256  ;;  %p821_p1 = scmp.lt.s32.totalorder %s725_s1, %s725_s1 }
   0x8   :  { %v90_v12 = vand.u32 4294901760, %v89_v9  ;;  %v100_v13 = vand.u32 4294901760, %v99_v10  ;;  %v142_v14 = vsub.f32 %v140_v8, %v141_v11  ;;  %p817_p0 = scmp.ne.s32.totalorder %s725_s1, %s816_s15  ;;  %p822_p2 = scmp.lt.s32.totalorder %s816_s15, %s816_s15 }
   0xa   :  { %v91_v15 = vsub.f32 %v89_v9, %v90_v12  ;;  %v101_v16 = vsub.f32 %v99_v10, %v100_v13  ;;  %v143_v17 = vand.u32 4294901760, %v142_v14  ;;  %p823_p3 = por %p822_p2, %p821_p1 }
   0xc   :  { %v92_v18 = vand.u32 4294901760, %v91_v15  ;;  %v102_v19 = vand.u32 4294901760, %v101_v16  ;;  %766 = vmatprep.subr.mxu1 %v143_v17  ;;  %p824_p4 = pnand %p823_p3, %p817_p0 }
   0xd   :  { %767 = vmatpush3.msra.mxu1 %v143_v17 }
   0xe   :  { %763 = vmatprep.mubr.f32.mxu0 %v92_v18  ;;  %769 = vmatmul.mubr.f32.vlgmr.msra.gmra.mxu1 %v98_v7 }
   0xf   :  { %764 = vmatmul.mubr.f32.vlgmr.msra.gmra.mxu0 %v102_v19  ;;  %776 = vmatprep.subr.mxu1 %v53_v3 }
  0x10   :  { %772 = vmatpush3.msra.mxu0 %v140_v8  ;;  %777 = vmatpush3.msra.mxu1 %v53_v3 }
  0x11   :  { %773 = vmatprep.mubr.f32.mxu0 %v89_v9  ;;  %778 = vmatprep.mubr.f32.mxu1 %v90_v12  ;;  %v843_v12 = vmov 1326507024  }
  0x12   :  { %781 = vmatprep.subr.mxu0 %v141_v11  ;;  %779 = vmatmul.mubr.f32.vlgmr.msra.gmra.mxu1 %v100_v13 }
  0x13   :  { %774 = vmatmul.mubr.f32.vlgmr.msra.gmra.mxu0 %v99_v10  ;;  %786 = vmatprep.subr.mxu1 %v53_v3 }
  0x14   :  { %782 = vmatpush3.msra.mxu0 %v141_v11  ;;  %787 = vmatpush3.msra.mxu1 %v53_v3  ;;  %v841_v3 = vmov 2102212464  }
  0x15   :  { %783 = vmatprep.mubr.f32.mxu0 %v88_v6  ;;  %788 = vmatprep.mubr.f32.mxu1 %v88_v6 }
  0x16   :  { %789 = vmatmul.mubr.f32.vlgmr.msra.gmra.mxu1 %v98_v7 }
  0x17   :  { %784 = vmatmul.mubr.f32.vlgmr.msra.gmra.mxu0 %v98_v7 }
  0xce   :  { %v770_v21 = vpop.f32.mrf.mxu1 }
  0xcf   :  { %v765_v20 = vpop.f32.mrf.mxu0 }
  0xd0   :  { %v180_v23 = vpop.f32.mrf.mxu1  ;;  %v187_v24 = vadd.f32 %v770_v21, %v765_v20 }
  0xd1   :  { %v94_v22 = vpop.f32.mrf.mxu0 }
  0xd2   :  { %v780_v26 = vpop.f32.mrf.mxu1  ;;  %v181_v27 = vadd.f32 %v180_v23, %v94_v22 }
  0xd3   :  { %v775_v25 = vpop.f32.mrf.mxu0 }
  0xd4   :  { %v268_v28 = vadd.f32 %v775_v25, %v187_v24  ;;  %v341_v30 = vpop.f32.mrf.mxu1 }
  0xd5   :  { %v260_v29 = vpop.f32.mrf.mxu0 }
  0xd6   :  { %v350_v31 = vadd.f32 %v780_v26, %v268_v28  ;;  %v261_v32 = vadd.f32 %v260_v29, %v181_v27  ;;  %v790_v34 = vpop.f32.mrf.mxu1 }
  0xd7   :  { %v785_v33 = vpop.f32.mrf.mxu0 }
  0xd8   :  { %v342_v35 = vadd.f32 %v341_v30, %v261_v32  ;;  %v430_v36 = vadd.f32 %v785_v33, %v350_v31  ;;  %v501_v40 = vpop.f32.mrf.mxu1 }
  0xd9   :  { %v423_v37 = vpop.f32.mrf.mxu0 }
  0xda   :  { %v871_v38 = vadd.f32 %v790_v34, %v430_v36  ;;  %v424_v39 = vadd.f32 %v423_v37, %v342_v35 }
  0xdc   :  { %v614_v41 = vand.u32 2147483647, %v871_v38  ;;  %v617_v42 = vand.u32 2139095040, %v871_v38  ;;  %v875_v43 = vadd.f32 %v501_v40, %v424_v39  ;;  %vm616_vm15 = vcmp.lt.s32.totalorder %v871_v38, 0 }
  0xde   :  { %v618_v44 = vshrl.u32 %v617_v42, 23  ;;  %v621_v45 = vand.u32 8388607, %v614_v41  ;;  %v514_v46 = vand.u32 2139095040, %v875_v43  ;;  %v511_v48 = vand.u32 2147483647, %v875_v43 }
  0xdf   :  { %vm925_vm0 = vcmp.le.f32.partialorder %v614_v41, 0.7853982 }
  0xe0   :  { %v739_v47 = vadd.s32 4294967169, %v618_v44  ;;  %v515_v49 = vshrl.u32 %v514_v46, 23  ;;  %v622_v51 = vor.u32 8388608, %v621_v45  ;;  %v518_v53 = vand.u32 8388607, %v511_v48 }
  0xe2   :  { %v624_v50 = vadd.s32 1, %v739_v47  ;;  %v735_v52 = vadd.s32 4294967169, %v515_v49  ;;  %v883_v58 = vshll.u32 %v622_v51, 8  ;;  %v519_v62 = vor.u32 8388608, %v518_v53 }
  0xe4   :  { %vm625_vm1 = vcmp.gt.s32.totalorder %v624_v50, 0  ;;  %v521_v55 = vadd.s32 1, %v735_v52  ;;  %v559_v31 = vshll.u32 %v519_v62, 8 }
  0xe5   :  { %v626_v54 = vsel %vm625_vm1, %v624_v50, 0  ;;  %vm513_vm1 = vcmp.lt.s32.totalorder %v875_v43, 0 }
  0xe6   :  { %v627_v56 = vshrl.u32 %v626_v54, 5  ;;  %v628_v57 = vand.u32 31, %v626_v54  ;;  %vm522_vm2 = vcmp.gt.s32.totalorder %v521_v55, 0 }
  0xe7   :  { %v523_v17 = vsel %vm522_vm2, %v521_v55, 0  ;;  %vm937_vm2 = vcmp.le.f32.partialorder %v511_v48, 0.7853982 }
  0xe8   :  { %v629_v59 = vsub.s32 32, %v628_v57  ;;  %v631_v61 = vshll.u32 %v838_v60, %v628_v57  ;;  %v634_v0 = vshll.u32 %v839_v63, %v628_v57  ;;  %v637_v2 = vshll.u32 %v840_v1, %v628_v57 }
  0xe9   :  { %v640_v4 = vshll.u32 %v841_v3, %v628_v57  ;;  %v643_v6 = vshll.u32 %v842_v5, %v628_v57  ;;  %vm646_vm3 = vcmp.lt.s32.totalorder %v627_v56, 1  ;;  %vm648_vm4 = vcmp.lt.s32.totalorder %v627_v56, 3 }
  0xea   :  { %v632_v7 = vshrl.u32 %v839_v63, %v629_v59  ;;  %v635_v8 = vshrl.u32 %v840_v1, %v629_v59  ;;  %v638_v9 = vshrl.u32 %v841_v3, %v629_v59  ;;  %v630_v10 = vshrl.u32 %v838_v60, %v629_v59 }
  0xeb   :  { %v641_v11 = vshrl.u32 %v842_v5, %v629_v59  ;;  %v644_v13 = vshrl.u32 %v843_v12, %v629_v59  ;;  %vm649_vm5 = vcmp.lt.s32.totalorder %v627_v56, 4  ;;  %v525_v20 = vand.u32 31, %v523_v17 }
  0xec   :  { %v633_v14 = vor.u32 %v632_v7, %v631_v61  ;;  %v636_v15 = vor.u32 %v635_v8, %v634_v0  ;;  %v639_v16 = vor.u32 %v638_v9, %v637_v2  ;;  %vm647_vm6 = vcmp.lt.s32.totalorder %v627_v56, 2 }
  0xed   :  { %v642_v18 = vor.u32 %v641_v11, %v640_v4  ;;  %v645_v19 = vor.u32 %v644_v13, %v643_v6  ;;  %v526_v28 = vsub.s32 32, %v525_v20  ;;  %v524_v35 = vshrl.u32 %v523_v17, 5 }
  0xee   :  { %v650_v21 = vsel %vm646_vm3, %v630_v10, %v633_v14  ;;  %v651_v22 = vsel %vm649_vm5, %v639_v16, 2102212464  ;;  %v654_v23 = vsel %vm646_vm3, %v633_v14, %v636_v15  ;;  %v658_v24 = vsel %vm646_vm3, %v636_v15, %v639_v16 }
  0xef   :  { %v652_v25 = vsel %vm648_vm4, %v636_v15, %v651_v22  ;;  %v655_v26 = vsel %vm649_vm5, %v642_v18, 920167782  ;;  %v659_v27 = vsel %vm649_vm5, %v645_v19, 1326507024  ;;  %v528_v42 = vshll.u32 %v838_v60, %v525_v20 }
  0xf0   :  { %v656_v29 = vsel %vm648_vm4, %v639_v16, %v655_v26  ;;  %v660_v30 = vsel %vm648_vm4, %v642_v18, %v659_v27  ;;  %v653_v32 = vsel %vm647_vm6, %v650_v21, %v652_v25  ;;  %v529_v44 = vshrl.u32 %v839_v63, %v526_v28 }
  0xf1   :  { %v657_v33 = vsel %vm647_vm6, %v654_v23, %v656_v29  ;;  %v661_v34 = vsel %vm647_vm6, %v658_v24, %v660_v30  ;;  %v531_v45 = vshll.u32 %v839_v63, %v525_v20  ;;  %v532_v46 = vshrl.u32 %v840_v1, %v526_v28 }
  0xf2   :  { %v895_v36 = vmul.u32.u64.low %v883_v58, %v661_v34  ;;  %v896_v37 = vmul.u32.u64.high %v883_v58, %v661_v34, %v895_v36  ;;  %v899_v39 = vmul.u32.u64.low %v883_v58, %v657_v33  ;;  %v900_v40 = vmul.u32.u64.high %v883_v58, %v657_v33, %v899_v39 }
  0xf3   :  { %v534_v47 = vshll.u32 %v840_v1, %v525_v20  ;;  %v535_v49 = vshrl.u32 %v841_v3, %v526_v28  ;;  %v537_v50 = vshll.u32 %v841_v3, %v525_v20  ;;  %v538_v51 = vshrl.u32 %v842_v5, %v526_v28 }
  0xf4   :  { %v530_v52 = vor.u32 %v529_v44, %v528_v42  ;;  %v533_v53 = vor.u32 %v532_v46, %v531_v45  ;;  %v540_v54 = vshll.u32 %v842_v5, %v525_v20  ;;  %v541_v55 = vshrl.u32 %v843_v12, %v526_v28 }
  0xf5   :  { %v669_v56 = vmul.u32 %v883_v58, %v653_v32  ;;  %vm671_vm7 = vc.u32 %v896_v37, %v899_v39  ;;  %v672_v57 = vadd.s32 1, %v900_v40  ;;  %v536_v59 = vor.u32 %v535_v49, %v534_v47 }
  0xf6   :  { %v527_v61 = vshrl.u32 %v838_v60, %v526_v28  ;;  %v539_v62 = vor.u32 %v538_v51, %v537_v50  ;;  %v542_v63 = vor.u32 %v541_v55, %v540_v54  ;;  %vm543_vm8 = vcmp.lt.s32.totalorder %v524_v35, 1 }
  0xf7   :  { %v673_v0 = vsel %vm671_vm7, %v672_v57, %v900_v40  ;;  %vm545_vm9 = vcmp.lt.s32.totalorder %v524_v35, 3  ;;  %vm546_vm10 = vcmp.lt.s32.totalorder %v524_v35, 4  ;;  %v551_v1 = vsel %vm543_vm8, %v530_v52, %v533_v53 }
  0xf8   :  { %v674_v2 = vadd.s32 %v673_v0, %v669_v56  ;;  %v548_v3 = vsel %vm546_vm10, %v536_v59, 2102212464  ;;  %v552_v4 = vsel %vm546_vm10, %v539_v62, 920167782  ;;  %v555_v58 = vsel %vm543_vm8, %v533_v53, %v536_v59 }
  0xf9   :  { %vm544_vm11 = vcmp.lt.s32.totalorder %v524_v35, 2  ;;  %v547_v5 = vsel %vm543_vm8, %v527_v61, %v530_v52  ;;  %v553_v6 = vsel %vm545_vm9, %v536_v59, %v552_v4  ;;  %v556_v7 = vsel %vm546_vm10, %v542_v63, 1326507024 }
  0xfa   :  { %v675_v8 = vadd.s32 536870912, %v674_v2  ;;  %v549_v9 = vsel %vm545_vm9, %v533_v53, %v548_v3  ;;  %v554_v10 = vsel %vm544_vm11, %v551_v1, %v553_v6  ;;  %v557_v60 = vsel %vm545_vm9, %v539_v62, %v556_v7 }
  0xfb   :  { %v558_v11 = vsel %vm544_vm11, %v555_v58, %v557_v60  ;;  %v910_v12 = vmul.u32.u64.low %v559_v31, %v554_v10  ;;  %v911_v13 = vmul.u32.u64.high %v559_v31, %v554_v10, %v910_v12  ;;  %v550_v17 = vsel %vm544_vm11, %v547_v5, %v549_v9 }
  0xfc   :  { %v676_v14 = vshrl.u32 %v675_v8, 30  ;;  %v913_v15 = vmul.u32.u64.low %v559_v31, %v558_v11  ;;  %v914_v16 = vmul.u32.u64.high %v559_v31, %v558_v11, %v913_v15  ;;  %v566_v21 = vmul.u32 %v559_v31, %v550_v17 }
  0xfd   :  { %v569_v19 = vadd.s32 1, %v911_v13  ;;  %v670_v34 = vadd.s32 %v899_v39, %v896_v37  ;;  %vm706_vm6 = vweird.f32 %v871_v38  ;;  %vm603_vm10 = vweird.f32 %v875_v43 }
  0xfe   :  { %v677_v18 = vshll.u32 %v676_v14, 30  ;;  %vm568_vm12 = vc.u32 %v914_v16, %v910_v12  ;;  %v567_v56 = vadd.s32 %v910_v12, %v914_v16  ;;  %v700_v58 = vsub.s32 4, %v676_v14 }
  0xff   :  { %v570_v22 = vsel %vm568_vm12, %v569_v19, %v911_v13 }
 0x100   :  { %v678_v20 = vsub.s32 %v674_v2, %v677_v18  ;;  %v571_v24 = vadd.s32 %v570_v22, %v566_v21  ;;  %v701_v8 = vsel %vm616_vm15, %v700_v58, %v676_v14 }
 0x101   :  { %v703_v41 = vsel %vm925_vm0, 0, %v701_v8 }
 0x102   :  { %v680_v23 = vsub.s32 0, %v678_v20  ;;  %v572_v26 = vadd.s32 536870912, %v571_v24  ;;  %v707_v12 = vand.u32 3, %v703_v41 }
 0x104   :  { %v740_v25 = vmin.u32 %v680_v23, %v678_v20  ;;  %v573_v28 = vshrl.u32 %v572_v26, 30  ;;  %vm712_vm3 = vcmp.eq.s32.totalorder %v707_v12, 2  ;;  %vm709_vm4 = vcmp.eq.s32.totalorder %v707_v12, 0 }
 0x105   :  { %vm708_vm5 = vcmp.lt.s32.totalorder %v707_v12, 2 }
 0x106   :  { %v682_v27 = vclz %v740_v25  ;;  %v574_v30 = vshll.u32 %v573_v28, 30  ;;  %v597_v13 = vsub.s32 4, %v573_v28 }
 0x108   :  { %v741_v29 = vadd.s32 4294967294, %v682_v27  ;;  %v575_v32 = vsub.s32 %v571_v24, %v574_v30  ;;  %v598_v17 = vsel %vm513_vm1, %v597_v13, %v573_v28 }
 0x10a   :  { %vm742_vm13 = vcmp.lt.s32.totalorder %v741_v29, 0  ;;  %v577_v36 = vsub.s32 0, %v575_v32 }
 0x10b   :  { %v685_v33 = vsel %vm742_vm13, 0, %v741_v29 }
 0x10c   :  { %v686_v35 = vsub.s32 32, %v685_v33  ;;  %v690_v31 = vsub.s32 4294967266, %v685_v33  ;;  %v687_v40 = vshll.u32 %v678_v20, %v685_v33  ;;  %v736_v45 = vmin.u32 %v577_v36, %v575_v32 }
 0x10d   :  { %v600_v20 = vsel %vm937_vm2, 0, %v598_v17 }
 0x10e   :  { %v688_v42 = vshrl.u32 %v670_v34, %v686_v35  ;;  %v691_v44 = vadd.s32 127, %v690_v31  ;;  %v579_v49 = vclz %v736_v45  ;;  %v604_v23 = vand.u32 3, %v600_v20 }
 0x110   :  { %v689_v46 = vor.u32 %v688_v42, %v687_v40  ;;  %v692_v47 = vshll.u32 %v691_v44, 23  ;;  %v737_v51 = vadd.s32 4294967294, %v579_v49  ;;  %vm609_vm7 = vcmp.eq.s32.totalorder %v604_v23, 2 }
 0x111   :  { %vm606_vm8 = vcmp.eq.s32.totalorder %v604_v23, 0  ;;  %vm605_vm9 = vcmp.lt.s32.totalorder %v604_v23, 2 }
 0x112   :  { %v693_v50 = vor.u32 4788187, %v692_v47  ;;  %v696_v53 = vcvt.s32.f32 %v689_v46  ;;  %vm738_vm14 = vcmp.lt.s32.totalorder %v737_v51, 0 }
 0x113   :  { %v582_v54 = vsel %vm738_vm14, 0, %v737_v51 }
 0x114   :  { %v694_v52 = vand.u32 2147483647, %v693_v50  ;;  %v583_v37 = vsub.s32 32, %v582_v54  ;;  %v587_v39 = vsub.s32 4294967266, %v582_v54  ;;  %v584_v59 = vshll.u32 %v575_v32, %v582_v54 }
 0x116   :  { %v697_v55 = vmul.f32 %v696_v53, %v694_v52  ;;  %v585_v61 = vshrl.u32 %v567_v56, %v583_v37  ;;  %v588_v62 = vadd.s32 127, %v587_v39 }
 0x118   :  { %v698_v57 = vxor.u32 2147483648, %v697_v55  ;;  %v586_v1 = vor.u32 %v585_v61, %v584_v59  ;;  %v589_v2 = vshll.u32 %v588_v62, 23 }
 0x11a   :  { %v699_v0 = vsel %vm616_vm15, %v698_v57, %v697_v55  ;;  %v590_v4 = vor.u32 4788187, %v589_v2  ;;  %v593_v6 = vcvt.s32.f32 %v586_v1 }
 0x11b   :  { %v702_v3 = vsel %vm925_vm0, %v871_v38, %v699_v0 }
 0x11c   :  { %808 = vcosq.f32 %v702_v3  ;;  %v591_v5 = vand.u32 2147483647, %v590_v4 }
 0x11d   :  { %810 = vsinq.f32 %v702_v3 }
 0x11e   :  { %v594_v7 = vmul.f32 %v593_v6, %v591_v5 }
 0x120   :  { %v595_v9 = vxor.u32 2147483648, %v594_v7 }
 0x122   :  { %v596_v60 = vsel %vm513_vm1, %v595_v9, %v594_v7 }
 0x123   :  { %v599_v11 = vsel %vm937_vm2, %v875_v43, %v596_v60 }
 0x124   :  { %812 = vcosq.f32 %v599_v11 }
 0x125   :  { %814 = vsinq.f32 %v599_v11 }
 0x129   :  { %v809_v14 = vpop.eup %808 }
 0x12a   :  { %v811_v15 = vpop.eup %810  ;;  %v713_v16 = vxor.u32 2147483648, %v809_v14 }
 0x12b   :  { %v710_v18 = vxor.u32 2147483648, %v811_v15 }
 0x12c   :  { %v714_v48 = vsel %vm712_vm3, %v713_v16, %v811_v15 }
 0x12d   :  { %v711_v19 = vsel %vm709_vm4, %v809_v14, %v710_v18 }
 0x12e   :  { %v715_v21 = vsel %vm708_vm5, %v711_v19, %v714_v48 }
 0x12f   :  { %v716_v22 = vsel %vm706_vm6, nan, %v715_v21 }
 0x130   :  { %718 = vst [vmem:[#allocation2 + $0x8] sm:$0xff] %v716_v22 }
 0x131   :  { %v813_v24 = vpop.eup %812 }
 0x132   :  { %v815_v25 = vpop.eup %814  ;;  %v610_v26 = vxor.u32 2147483648, %v813_v24 }
 0x133   :  { %v607_v27 = vxor.u32 2147483648, %v815_v25 }
 0x134   :  { %v611_v28 = vsel %vm609_vm7, %v610_v26, %v815_v25 }
 0x135   :  { %v608_v29 = vsel %vm606_vm8, %v813_v24, %v607_v27 }
 0x136   :  { %v612_v30 = vsel %vm605_vm9, %v608_v29, %v611_v28 }
 0x137   :  { %v613_v38 = vsel %vm603_vm10, nan, %v612_v30 }
 0x138   :  { %717 = vst [vmem:[#allocation2] sm:$0xff] %v613_v38 }
 0x139   :  { %827 = shalt.err (!%p824_p4)
}
 0x13a   :  { %s845_s16 = smov 128   ;;  %s846_s17 = smov 8  }
 0x13b   :  { %730 = dma.vmem_to_hbm [thread:$0]  %s725_s1, 256, %s953_s2, [#allocation3], %s845_s16, %s845_s16, %s846_s17  }
 0x13c   :  { %836 = dma.done.wait [#allocation3], 256  }
 0x13d   :  { %837 = vsyncadd [#allocation3], 4294967040 }
 0x13e   :  { %734 = vsyncpa [#allocation3], 1 }

</bundles_post_ra>
